<compile_context>
chip_gen: v7x
topology: tpu7x:2x2x1
jax: 0.10.0
libtpu: 0.0.40
codegen_flags: <defaults>
</compile_context>

<pallas_src>
import functools

import jax
import jax.numpy as jnp
from jax import lax
from jax.experimental import pallas as pl
from jax.experimental.pallas import tpu as pltpu


def _cdiv(a, b):
    return -(-a // b)


def _disparity_kernel(cost_ref, out_ref, *, match_similarity, chunk_rows):
    """cost_ref: (1, D, TR, C) block; out_ref: (1, TR, C) block."""
    _, D, TR, C = cost_ref.shape
    n_chunks = TR // chunk_rows  # TR is constructed as a multiple of chunk_rows

    def chunk_body(ci, carry):
        r0 = pl.multiple_of(ci * chunk_rows, chunk_rows)
        rows = pl.ds(r0, chunk_rows)

        def load(d):
            return cost_ref[0, d, rows, :].astype(jnp.float32)

        # Pass 1: per-pixel softmax stabilizer over the disparity axis.  For
        # match_similarity=False the negation is folded in (track the min).
        m = load(0)
        for d in range(1, D):
            x = load(d)
            m = jnp.maximum(m, x) if match_similarity else jnp.minimum(m, x)

        # Pass 2: fused accumulation of the softmax denominator and the
        # disparity-weighted numerator; accumulators stay vreg-resident
        # across the (unrolled) D loop — no per-d VMEM writeback.
        x0 = load(0)
        den = jnp.exp(x0 - m) if match_similarity else jnp.exp(m - x0)
        num = jnp.zeros_like(den)  # disparity candidate 0 contributes 0
        for d in range(1, D):
            x = load(d)
            e = jnp.exp(x - m) if match_similarity else jnp.exp(m - x)
            den = den + e
            num = num + e * jnp.float32(d)

        out_ref[0, rows, :] = (num / den).astype(out_ref.dtype)
        return carry

    lax.fori_loop(0, n_chunks, chunk_body, 0)


def _plan_tiles(B, D, R, C, itemsize):
    """Pick (tile_rows, chunk_rows, vmem_limit_bytes) for (1, D, tile_rows, C) blocks."""
    # Sublane alignment of the native (packed) tiling for this dtype.
    base = 8 if itemsize >= 4 else (16 if itemsize == 2 else 32)
    # Register-resident spatial chunk: ~16 KiB of f32 per accumulator (2-4 vregs).
    chunk_rows = (16384 // (4 * C)) // base * base
    chunk_rows = max(base, min(64, chunk_rows))

    # Generation-aware VMEM budget: 64 MiB physical on v7x, 128 MiB on v5e/v6e.
    try:
        cap = int(pltpu.get_tpu_info().vmem_capacity_bytes)
    except Exception:
        cap = 64 * 1024 * 1024  # conservative (v7x-sized) fallback
    vmem_limit = max(48 * 1024 * 1024, min(cap * 3 // 4, 100 * 1024 * 1024))

    if R <= chunk_rows:
        return R, R, vmem_limit

    # Per-input-buffer budget (the pipeline double-buffers it): ~24 MiB on the
    # 128 MiB parts, ~12 MiB on v7x, so 2*in + out + temps stay well under cap.
    per_buffer = max(8 * 1024 * 1024, min(24 * 1024 * 1024, cap // 5))
    bytes_per_row = D * C * itemsize
    tile_rows = (per_buffer // bytes_per_row) // chunk_rows * chunk_rows
    tile_rows = max(chunk_rows, min(tile_rows, (R // chunk_rows) * chunk_rows))

    # Megacore balance (v7x: 2 TCs): aim for >= ~8 total grid steps when R allows.
    want_tiles = _cdiv(8, B)
    if _cdiv(R, tile_rows) < want_tiles:
        capped = _cdiv(_cdiv(R, want_tiles), chunk_rows) * chunk_rows
        tile_rows = max(chunk_rows, min(tile_rows, capped))
    return tile_rows, chunk_rows, vmem_limit


def disparity_estimation(cost_volume, max_disp, match_similarity=True):
    """Pallas equivalent of DisparityEstimation.forward.

    cost_volume: [B, D, H, W]; returns disp: [B, H, W] in the input dtype.
    `max_disp` has no numerical effect (both reference branches reduce to
    arange(0, D) with D = cost_volume.shape[1]); kept for API parity.
    """
    assert cost_volume.ndim == 4
    B, D, H, W = cost_volume.shape
    del max_disp

    # Lane-dense spatial factorization: flatten H*W onto a 128-wide last axis
    # when possible (free reshape of a contiguous array); otherwise keep (H, W).
    HW = H * W
    if HW % 128 == 0:
        R, C = HW // 128, 128
    else:
        R, C = H, W  # odd widths: lanes padded/masked, still correct

    itemsize = jnp.dtype(cost_volume.dtype).itemsize
    tile_rows, chunk_rows, vmem_limit = _plan_tiles(B, D, R, C, itemsize)
    grid = (B, _cdiv(R, tile_rows))

    kernel = functools.partial(
        _disparity_kernel,
        match_similarity=match_similarity,
        chunk_rows=chunk_rows,
    )

    out = pl.pallas_call(
        kernel,
        out_shape=jax.ShapeDtypeStruct((B, R, C), cost_volume.dtype),
        grid_spec=pltpu.PrefetchScalarGridSpec(
            num_scalar_prefetch=0,
            grid=grid,
            in_specs=[
                pl.BlockSpec((1, D, tile_rows, C), lambda b, r: (b, 0, r, 0)),
            ],
            out_specs=pl.BlockSpec((1, tile_rows, C), lambda b, r: (b, r, 0)),
        ),
        compiler_params=pltpu.CompilerParams(
            dimension_semantics=("parallel", "parallel"),
            vmem_limit_bytes=vmem_limit,
        ),
    )(cost_volume.reshape(B, D, R, C))

    return out.reshape(B, H, W)


def _reference(cost_volume, match_similarity=True):
    c = cost_volume if match_similarity else -cost_volume
    c = c.astype(jnp.float32)
    prob = jax.nn.softmax(c, axis=1)
    d = jnp.arange(c.shape[1], dtype=jnp.float32).reshape(1, -1, 1, 1)
    return jnp.sum(prob * d, axis=1)


if __name__ == "__main__":
    key = jax.random.PRNGKey(0)
    B, D, H, W = 2, 8, 16, 16  # D = max_disp
    cost_volume = jax.random.normal(key, (B, D, H, W), dtype=jnp.float32)

    # Lane-dense main path (H*W % 128 == 0).
    disp = disparity_estimation(cost_volume, max_disp=D, match_similarity=True)
    disp = jax.block_until_ready(disp)
    ref = _reference(cost_volume, match_similarity=True)
    assert disp.shape == (B, H, W)
    assert jnp.allclose(disp, ref, atol=1e-3, rtol=1e-3)

    # match_similarity=False (negation folded into the softmax).
    disp_neg = jax.block_until_ready(
        disparity_estimation(cost_volume, max_disp=D, match_similarity=False))
    ref_neg = _reference(cost_volume, match_similarity=False)
    assert jnp.allclose(disp_neg, ref_neg, atol=1e-3, rtol=1e-3)

    # Fallback path: H*W not a multiple of 128 (masked-lane blocks).
    cv_odd = jax.random.normal(jax.random.PRNGKey(1), (2, 8, 16, 20),
                               dtype=jnp.float32)
    disp_odd = jax.block_until_ready(
        disparity_estimation(cv_odd, max_disp=8, match_similarity=True))
    ref_odd = _reference(cv_odd, match_similarity=True)
    assert disp_odd.shape == (2, 16, 20)
    assert jnp.allclose(disp_odd, ref_odd, atol=1e-3, rtol=1e-3)

    print("KERNEL_OK")
</pallas_src>

<mosaic_0001>
module attributes {stable_mosaic.version = 11 : i64} {
  func.func @_disparity_kernel(%arg0: i32, %arg1: i32, %arg2: memref<1x8x2x128xf32, #tpu.memory_space<vmem>>, %arg3: memref<1x2x128xf32, #tpu.memory_space<vmem>>) attributes {dimension_semantics = [#tpu.dimension_semantics<parallel>, #tpu.dimension_semantics<parallel>], iteration_bounds = array<i64: 2, 1>, scalar_prefetch = 0 : i64, scratch_operands = 0 : i64, tpu.core_type = #tpu.core_type<tc>, window_params = [{transform_indices = @transform_0, window_bounds = array<i64: 1, 8, 2, 128>}, {transform_indices = @transform_1, window_bounds = array<i64: 1, 2, 128>}]} {
    %c0_i32 = arith.constant 0 : i32
    %c2_i32 = arith.constant 2 : i32
    %0 = arith.muli %c0_i32, %c2_i32 : i32
    %1 = tpu.assume_multiple %0, 2 : i32
    %c0 = arith.constant 0 : index
    %c0_0 = arith.constant 0 : index
    %2 = arith.index_cast %1 : i32 to index
    %c0_1 = arith.constant 0 : index
    %3 = vector.load %arg2[%c0, %c0_0, %2, %c0_1] : memref<1x8x2x128xf32, #tpu.memory_space<vmem>>, vector<1x1x2x128xf32>
    %4 = vector.shape_cast %3 : vector<1x1x2x128xf32> to vector<2x128xf32>
    %c0_2 = arith.constant 0 : index
    %c1 = arith.constant 1 : index
    %5 = arith.index_cast %1 : i32 to index
    %c0_3 = arith.constant 0 : index
    %6 = vector.load %arg2[%c0_2, %c1, %5, %c0_3] : memref<1x8x2x128xf32, #tpu.memory_space<vmem>>, vector<1x1x2x128xf32>
    %7 = vector.shape_cast %6 : vector<1x1x2x128xf32> to vector<2x128xf32>
    %8 = arith.maximumf %4, %7 : vector<2x128xf32>
    %c0_4 = arith.constant 0 : index
    %c2 = arith.constant 2 : index
    %9 = arith.index_cast %1 : i32 to index
    %c0_5 = arith.constant 0 : index
    %10 = vector.load %arg2[%c0_4, %c2, %9, %c0_5] : memref<1x8x2x128xf32, #tpu.memory_space<vmem>>, vector<1x1x2x128xf32>
    %11 = vector.shape_cast %10 : vector<1x1x2x128xf32> to vector<2x128xf32>
    %12 = arith.maximumf %8, %11 : vector<2x128xf32>
    %c0_6 = arith.constant 0 : index
    %c3 = arith.constant 3 : index
    %13 = arith.index_cast %1 : i32 to index
    %c0_7 = arith.constant 0 : index
    %14 = vector.load %arg2[%c0_6, %c3, %13, %c0_7] : memref<1x8x2x128xf32, #tpu.memory_space<vmem>>, vector<1x1x2x128xf32>
    %15 = vector.shape_cast %14 : vector<1x1x2x128xf32> to vector<2x128xf32>
    %16 = arith.maximumf %12, %15 : vector<2x128xf32>
    %c0_8 = arith.constant 0 : index
    %c4 = arith.constant 4 : index
    %17 = arith.index_cast %1 : i32 to index
    %c0_9 = arith.constant 0 : index
    %18 = vector.load %arg2[%c0_8, %c4, %17, %c0_9] : memref<1x8x2x128xf32, #tpu.memory_space<vmem>>, vector<1x1x2x128xf32>
    %19 = vector.shape_cast %18 : vector<1x1x2x128xf32> to vector<2x128xf32>
    %20 = arith.maximumf %16, %19 : vector<2x128xf32>
    %c0_10 = arith.constant 0 : index
    %c5 = arith.constant 5 : index
    %21 = arith.index_cast %1 : i32 to index
    %c0_11 = arith.constant 0 : index
    %22 = vector.load %arg2[%c0_10, %c5, %21, %c0_11] : memref<1x8x2x128xf32, #tpu.memory_space<vmem>>, vector<1x1x2x128xf32>
    %23 = vector.shape_cast %22 : vector<1x1x2x128xf32> to vector<2x128xf32>
    %24 = arith.maximumf %20, %23 : vector<2x128xf32>
    %c0_12 = arith.constant 0 : index
    %c6 = arith.constant 6 : index
    %25 = arith.index_cast %1 : i32 to index
    %c0_13 = arith.constant 0 : index
    %26 = vector.load %arg2[%c0_12, %c6, %25, %c0_13] : memref<1x8x2x128xf32, #tpu.memory_space<vmem>>, vector<1x1x2x128xf32>
    %27 = vector.shape_cast %26 : vector<1x1x2x128xf32> to vector<2x128xf32>
    %28 = arith.maximumf %24, %27 : vector<2x128xf32>
    %c0_14 = arith.constant 0 : index
    %c7 = arith.constant 7 : index
    %29 = arith.index_cast %1 : i32 to index
    %c0_15 = arith.constant 0 : index
    %30 = vector.load %arg2[%c0_14, %c7, %29, %c0_15] : memref<1x8x2x128xf32, #tpu.memory_space<vmem>>, vector<1x1x2x128xf32>
    %31 = vector.shape_cast %30 : vector<1x1x2x128xf32> to vector<2x128xf32>
    %32 = arith.maximumf %28, %31 : vector<2x128xf32>
    %c0_16 = arith.constant 0 : index
    %c0_17 = arith.constant 0 : index
    %33 = arith.index_cast %1 : i32 to index
    %c0_18 = arith.constant 0 : index
    %34 = vector.load %arg2[%c0_16, %c0_17, %33, %c0_18] : memref<1x8x2x128xf32, #tpu.memory_space<vmem>>, vector<1x1x2x128xf32>
    %35 = vector.shape_cast %34 : vector<1x1x2x128xf32> to vector<2x128xf32>
    %36 = arith.subf %35, %32 : vector<2x128xf32>
    %37 = math.exp %36 : vector<2x128xf32>
    %cst = arith.constant 0.000000e+00 : f32
    %38 = vector.broadcast %cst : f32 to vector<2x128xf32>
    %c0_19 = arith.constant 0 : index
    %c1_20 = arith.constant 1 : index
    %39 = arith.index_cast %1 : i32 to index
    %c0_21 = arith.constant 0 : index
    %40 = vector.load %arg2[%c0_19, %c1_20, %39, %c0_21] : memref<1x8x2x128xf32, #tpu.memory_space<vmem>>, vector<1x1x2x128xf32>
    %41 = vector.shape_cast %40 : vector<1x1x2x128xf32> to vector<2x128xf32>
    %42 = arith.subf %41, %32 : vector<2x128xf32>
    %43 = math.exp %42 : vector<2x128xf32>
    %44 = arith.addf %37, %43 : vector<2x128xf32>
    %cst_22 = arith.constant 1.000000e+00 : f32
    %45 = vector.broadcast %cst_22 : f32 to vector<2x128xf32>
    %46 = arith.mulf %43, %45 : vector<2x128xf32>
    %47 = arith.addf %38, %46 : vector<2x128xf32>
    %c0_23 = arith.constant 0 : index
    %c2_24 = arith.constant 2 : index
    %48 = arith.index_cast %1 : i32 to index
    %c0_25 = arith.constant 0 : index
    %49 = vector.load %arg2[%c0_23, %c2_24, %48, %c0_25] : memref<1x8x2x128xf32, #tpu.memory_space<vmem>>, vector<1x1x2x128xf32>
    %50 = vector.shape_cast %49 : vector<1x1x2x128xf32> to vector<2x128xf32>
    %51 = arith.subf %50, %32 : vector<2x128xf32>
    %52 = math.exp %51 : vector<2x128xf32>
    %53 = arith.addf %44, %52 : vector<2x128xf32>
    %cst_26 = arith.constant 2.000000e+00 : f32
    %54 = vector.broadcast %cst_26 : f32 to vector<2x128xf32>
    %55 = arith.mulf %52, %54 : vector<2x128xf32>
    %56 = arith.addf %47, %55 : vector<2x128xf32>
    %c0_27 = arith.constant 0 : index
    %c3_28 = arith.constant 3 : index
    %57 = arith.index_cast %1 : i32 to index
    %c0_29 = arith.constant 0 : index
    %58 = vector.load %arg2[%c0_27, %c3_28, %57, %c0_29] : memref<1x8x2x128xf32, #tpu.memory_space<vmem>>, vector<1x1x2x128xf32>
    %59 = vector.shape_cast %58 : vector<1x1x2x128xf32> to vector<2x128xf32>
    %60 = arith.subf %59, %32 : vector<2x128xf32>
    %61 = math.exp %60 : vector<2x128xf32>
    %62 = arith.addf %53, %61 : vector<2x128xf32>
    %cst_30 = arith.constant 3.000000e+00 : f32
    %63 = vector.broadcast %cst_30 : f32 to vector<2x128xf32>
    %64 = arith.mulf %61, %63 : vector<2x128xf32>
    %65 = arith.addf %56, %64 : vector<2x128xf32>
    %c0_31 = arith.constant 0 : index
    %c4_32 = arith.constant 4 : index
    %66 = arith.index_cast %1 : i32 to index
    %c0_33 = arith.constant 0 : index
    %67 = vector.load %arg2[%c0_31, %c4_32, %66, %c0_33] : memref<1x8x2x128xf32, #tpu.memory_space<vmem>>, vector<1x1x2x128xf32>
    %68 = vector.shape_cast %67 : vector<1x1x2x128xf32> to vector<2x128xf32>
    %69 = arith.subf %68, %32 : vector<2x128xf32>
    %70 = math.exp %69 : vector<2x128xf32>
    %71 = arith.addf %62, %70 : vector<2x128xf32>
    %cst_34 = arith.constant 4.000000e+00 : f32
    %72 = vector.broadcast %cst_34 : f32 to vector<2x128xf32>
    %73 = arith.mulf %70, %72 : vector<2x128xf32>
    %74 = arith.addf %65, %73 : vector<2x128xf32>
    %c0_35 = arith.constant 0 : index
    %c5_36 = arith.constant 5 : index
    %75 = arith.index_cast %1 : i32 to index
    %c0_37 = arith.constant 0 : index
    %76 = vector.load %arg2[%c0_35, %c5_36, %75, %c0_37] : memref<1x8x2x128xf32, #tpu.memory_space<vmem>>, vector<1x1x2x128xf32>
    %77 = vector.shape_cast %76 : vector<1x1x2x128xf32> to vector<2x128xf32>
    %78 = arith.subf %77, %32 : vector<2x128xf32>
    %79 = math.exp %78 : vector<2x128xf32>
    %80 = arith.addf %71, %79 : vector<2x128xf32>
    %cst_38 = arith.constant 5.000000e+00 : f32
    %81 = vector.broadcast %cst_38 : f32 to vector<2x128xf32>
    %82 = arith.mulf %79, %81 : vector<2x128xf32>
    %83 = arith.addf %74, %82 : vector<2x128xf32>
    %c0_39 = arith.constant 0 : index
    %c6_40 = arith.constant 6 : index
    %84 = arith.index_cast %1 : i32 to index
    %c0_41 = arith.constant 0 : index
    %85 = vector.load %arg2[%c0_39, %c6_40, %84, %c0_41] : memref<1x8x2x128xf32, #tpu.memory_space<vmem>>, vector<1x1x2x128xf32>
    %86 = vector.shape_cast %85 : vector<1x1x2x128xf32> to vector<2x128xf32>
    %87 = arith.subf %86, %32 : vector<2x128xf32>
    %88 = math.exp %87 : vector<2x128xf32>
    %89 = arith.addf %80, %88 : vector<2x128xf32>
    %cst_42 = arith.constant 6.000000e+00 : f32
    %90 = vector.broadcast %cst_42 : f32 to vector<2x128xf32>
    %91 = arith.mulf %88, %90 : vector<2x128xf32>
    %92 = arith.addf %83, %91 : vector<2x128xf32>
    %c0_43 = arith.constant 0 : index
    %c7_44 = arith.constant 7 : index
    %93 = arith.index_cast %1 : i32 to index
    %c0_45 = arith.constant 0 : index
    %94 = vector.load %arg2[%c0_43, %c7_44, %93, %c0_45] : memref<1x8x2x128xf32, #tpu.memory_space<vmem>>, vector<1x1x2x128xf32>
    %95 = vector.shape_cast %94 : vector<1x1x2x128xf32> to vector<2x128xf32>
    %96 = arith.subf %95, %32 : vector<2x128xf32>
    %97 = math.exp %96 : vector<2x128xf32>
    %98 = arith.addf %89, %97 : vector<2x128xf32>
    %cst_46 = arith.constant 7.000000e+00 : f32
    %99 = vector.broadcast %cst_46 : f32 to vector<2x128xf32>
    %100 = arith.mulf %97, %99 : vector<2x128xf32>
    %101 = arith.addf %92, %100 : vector<2x128xf32>
    %102 = arith.divf %101, %98 : vector<2x128xf32>
    %c0_47 = arith.constant 0 : index
    %103 = arith.index_cast %1 : i32 to index
    %c0_48 = arith.constant 0 : index
    %104 = vector.load %arg3[%c0_47, %103, %c0_48] : memref<1x2x128xf32, #tpu.memory_space<vmem>>, vector<1x2x128xf32>
    %105 = vector.shape_cast %104 : vector<1x2x128xf32> to vector<2x128xf32>
    %106 = vector.shape_cast %102 : vector<2x128xf32> to vector<1x2x128xf32>
    tpu.vector_store %arg3[%c0_47, %103, %c0_48], %106 {strides = array<i32>} : memref<1x2x128xf32, #tpu.memory_space<vmem>>, vector<1x2x128xf32>,
    %c1_i32 = arith.constant 1 : i32
    return
  }
  func.func @transform_0(%arg0: i32, %arg1: i32) -> (i32, i32, i32, i32) {
    %c0_i32 = arith.constant 0 : i32
    %c0_i32_0 = arith.constant 0 : i32
    %c0_i32_1 = arith.constant 0 : i32
    return %arg0, %c0_i32, %arg1, %c0_i32_0 : i32, i32, i32, i32
  }
  func.func @transform_1(%arg0: i32, %arg1: i32) -> (i32, i32, i32) {
    %c0_i32 = arith.constant 0 : i32
    %c0_i32_0 = arith.constant 0 : i32
    return %arg0, %arg1, %c0_i32 : i32, i32, i32
  }
}

</mosaic_0001>

<bundles_post_ra>
// kernel: tpu_custom_call.1
= control target key start
LH: loop header
LB: loop body
LE: loop exit
PB: predicated region body
PF: predicated region fallthrough
CT: control target
= control target key end

     0   :  { %6 = vsyncpa [#allocation3], 0  ;;  %s737_s0 = inlined_call_operand.hbm [shape: f32[2,8,2,128], index: 0, kind: input, shape index: {}]   ;;  %s738_s1 = inlined_call_operand.hbm [shape: f32[2,2,128], index: 1, kind: output, shape index: {}]  }
   0x1   :  { %8 = vsyncpa [#allocation3 + $0x1], 0 }
   0x2   :  { %9 = vsyncpa [#allocation4], 0 }
   0x3   :  { %11 = vsyncpa [#allocation4 + $0x1], 0  ;;  %s563_s6 = smov 0   ;;  %s565_s7 = smov 0  }
   0x4   :  { %s567_s8 = smov 0   ;;  %s569_s9 = smov 0  }
   0x5   :  { %s571_s10 = smov 0   ;;  %s573_s11 = smov 0  }
   0x6 LB: > { %s331_s12 = sadd.s32 4294967295, %s547_s11   ;;  %s332_s13 = sadd.s32 4294967294, %s547_s11   ;;  %s547_s11 = sphi %s573_s11, %s17_s11   ;;  %s543_s10 = sphi %s571_s10, %s753_s10   ;;  %s539_s9 = sphi %s569_s9, %s752_s9   ;;  %s535_s8 = sphi %s567_s8, %s751_s8   ;;  %s531_s7 = sphi %s565_s7, %s750_s7   ;;  %s527_s6 = sphi %s563_s6, %s749_s6  }
   0x7   : > { %s29_s14 = sadd.s32 1, %s543_s10  ;;  %s38_s15 = sadd.s32 1, %s535_s8 }
   0x8   : > { %p31_p0 = scmp.ge.s32.totalorder %s29_s14, 2  ;;  %p45_p1 = scmp.ne.s32.totalorder %s535_s8, %s531_s7 }
   0x9   : > { %p46_p2 = scmp.eq.s32.totalorder %s547_s11, 0  ;;  %p51_p3 = scmp.ne.s32.totalorder %s531_s7, %s527_s6 }
   0xa   : > { %s755_s14 = smov (%p31_p0, %s29_s14), 0  ;;  %p52_p5 = scmp.eq.s32.totalorder %s331_s12, 0 }
   0xb   : > { %p604_p4 = por %p46_p2, %p45_p1  ;;  %s33_s17 = ssub.s32 %s543_s10, %s755_s14 }
   0xc   : > { %p77_p6 = scmp.eq.s32.totalorder %s331_s12, 1  ;;  %p36_p7 = scmp.eq.s32.totalorder %s33_s17, 0 }
   0xd   : > { %p610_p8 = por %p52_p5, %p51_p3  ;;  %p83_p10 = scmp.eq.s32.totalorder %s332_s13, 1 }
   0xe   : > { %p614_p9 = por %p77_p6, %p45_p1  ;;  %p365_p13 = scmp.lt.s32.totalorder %s547_s11, 2 }
   0xf   : > { %s619_s20 = scalar_select %p36_p7, %s535_s8, %s38_s15  }
  0x10   : > { %s742_s19 = scalar_select %p614_p9, 1, 0 }
  0x11   : > { %p621_p11 = por %p83_p10, %p51_p3  ;;  %s103_s22 = sand.u32 1, %s535_s8  }
  0x12   : > { %s335_s23 = sshll.u32 %s103_s22, 4  ;;  %s352_s24 = sshll.u32 %s543_s10, 8 }
  0x13   : > { %s743_s21 = scalar_select %p621_p11, 1, 0 }
  0x14   : > { %s632_s27 = scalar_lea.hbm %s737_s0, %s352_s24  ;;  %s107_s28 = scalar_lea.vmem [#allocation2], %s335_s23 }
  0x15   : > { %s115_s29 = sshll.u32 %s107_s28, 4  ;;  %p638_p0 = pnand %p365_p13, %p604_p4  ;;  %s634_s29 = int_to_ptr.vmem [resolvable:$true] %s115_s29 }
  0x16   : > { %s643_s2 = scalar_lea.sflag [#allocation3], %s103_s22  ;;  %s435_s3 = scalar_lea.hbm %s632_s27, 256 }
  0x17   : > { %p436_p2 = scmp.ne.s32.totalorder %s632_s27, %s435_s3  ;;  %p437_p3 = pneg %p638_p0 }
  0x18   : > { %s440_s12 = scalar_lea.hbm %s737_s0, 512  ;;  %p441_p4 = scmp.lt.u32.totalorder %s632_s27, %s737_s0 }
  0x19   : > { %p438_p5 = pnand %p437_p3, %p436_p2  ;;  %p442_p7 = scmp.lt.u32.totalorder %s440_s12, %s435_s3 }
  0x1a   : > { %p444_p13 = scmp.lt.u32.totalorder %s435_s3, %s632_s27 }
  0x1b   : > { %p439_p6 = pneg %p438_p5  ;;  %p443_p10 = por %p442_p7, %p441_p4 }
  0x1d   : > { %p445_p12 = por %p444_p13, %p443_p10 }
  0x1f   : > { %p446_p1 = pnand %p445_p12, %p439_p6 }
  0x21   : > { %449 = shalt.err (!%p446_p1)
}
  0x22   : > { %s450_s16 = scalar_lea.vmem %s634_s29, 256  ;;  %s549_s17 = smov [#allocation2]  }
  0x23   : > { %p451_p2 = scmp.ne.s32.totalorder %s634_s29, %s450_s16  ;;  %s455_s22 = sshll.u32 %s549_s17, 4  ;;  %s456_s22 = int_to_ptr.vmem [resolvable:$false] %s455_s22 }
  0x24   : > { %s457_s23 = scalar_lea.vmem %s456_s22, 512  ;;  %p458_p9 = scmp.lt.s32.totalorder %s634_s29, %s456_s22 }
  0x25   : > { %p453_p5 = pnand %p451_p2, %p437_p3  ;;  %p459_p4 = scmp.lt.s32.totalorder %s457_s23, %s450_s16 }
  0x27   : > { %p454_p11 = pneg %p453_p5  ;;  %p460_p7 = por %p459_p4, %p458_p9 }
  0x29   : > { %p461_p10 = pnand %p460_p7, %p454_p11 }
  0x2b   : > { %464 = shalt.err (!%p461_p10)
}
  0x2c   : > { %s550_s24 = smov 32   ;;  %s551_s25 = smov 2  }
  0x2d   : > { %360 = dma.hbm_to_vmem [thread:$0]  (!%p638_p0), %s632_s27, 256, %s634_s29, %s643_s2, %s550_s24, %s550_s24, %s551_s25  }
  0x2e   : > { %p123_p12 = scmp.lt.s32.totalorder %s547_s11, 3  ;;  %p745_p1 = scmp.ge.s32.totalorder %s547_s11, 1 }
  0x30   : > { %p124_p3 = pnand %p745_p1, %p123_p12 }
  0x31   : > { %s675_s26 = sand.u32 (!%p124_p3), 1, %s531_s7  }
  0x32   : > { %127 = sbr.rel (%p124_p3) target bundleno = 130 (0x82), region = 24  ;;  %s339_s28 = sshll.u32 (!%p124_p3), %s675_s26, 4 }
  0x33   : > { %s130_s3 = scalar_lea.sflag (!%p124_p3), [#allocation3], %s675_s26  ;;  %s133_s4 = scalar_lea.vmem (!%p124_p3), [#allocation2], %s339_s28 }
  0x39   : > { %518 = dma.done.wait (%p610_p8), %s130_s3, 256  }
  0x3a   : > { %520 = vsyncadd (%p610_p8), %s130_s3, 4294967040  ;;  %v152_v0 = vld [vmem:[%s133_s4] sm:$0x3]  ;;  %v341_v1 = vld [vmem:[%s133_s4 + $0x2] sm:$0x3]  ;;  %s340_s18 = sshll.u32 %s675_s26, 1 }
  0x3b   : > { %v342_v2 = vld [vmem:[%s133_s4 + $0x4] sm:$0x3]  ;;  %v156_v3 = vmax.f32 %v152_v0, %v341_v1  ;;  %v343_v4 = vld [vmem:[%s133_s4 + $0x6] sm:$0x3]  ;;  %v344_v6 = vld [vmem:[%s133_s4 + $0x8] sm:$0x3] }
  0x3c   : > { %v345_v8 = vld [vmem:[%s133_s4 + $0xa] sm:$0x3]  ;;  %v346_v10 = vld [vmem:[%s133_s4 + $0xc] sm:$0x3]  ;;  %v347_v12 = vld [vmem:[%s133_s4 + $0xe] sm:$0x3] }
  0x3d   : > { %v160_v5 = vmax.f32 %v156_v3, %v342_v2  ;;  %s151_s27 = scalar_lea.vmem [#allocation5], %s340_s18  ;;  %s349_s30 = sshll.u32 %s539_s9, 5 }
  0x3e   : > { %s243_s29 = sshll.u32 %s151_s27, 4  ;;  %s690_s12 = scalar_lea.hbm %s738_s1, %s349_s30  ;;  %s685_s29 = int_to_ptr.vmem [resolvable:$true] %s243_s29 }
  0x3f   : > { %v164_v7 = vmax.f32 %v160_v5, %v343_v4  ;;  %s229_s13 = scalar_lea.sflag [#allocation4], %s675_s26  ;;  %s465_s15 = scalar_lea.vmem %s685_s29, 32 }
  0x40   : > { %p466_p8 = scmp.ne.s32.totalorder %s685_s29, %s465_s15  ;;  %p746_p9 = scmp.ne.s32.totalorder %s742_s19, 0 }
  0x41   : > { %v168_v9 = vmax.f32 %v164_v7, %v344_v6  ;;  %s552_s9 = smov [#allocation5]  }
  0x42   : > { %p467_p11 = pnand %p466_p8, %p746_p9  ;;  %s469_s16 = sshll.u32 %s552_s9, 4  ;;  %s470_s16 = int_to_ptr.vmem [resolvable:$false] %s469_s16 }
  0x43   : > { %v172_v11 = vmax.f32 %v168_v9, %v345_v8  ;;  %s471_s17 = scalar_lea.vmem %s470_s16, 64  ;;  %p472_p6 = scmp.lt.s32.totalorder %s685_s29, %s470_s16 }
  0x44   : > { %p468_p0 = pneg %p467_p11  ;;  %p473_p13 = scmp.lt.s32.totalorder %s471_s17, %s465_s15 }
  0x45   : > { %v176_v13 = vmax.f32 %v172_v11, %v346_v10 }
  0x46   : > { %p474_p2 = por %p473_p13, %p472_p6 }
  0x47   : > { %v180_v14 = vmax.f32 %v176_v13, %v347_v12 }
  0x48   : > { %p475_p5 = pnand %p474_p2, %p468_p0 }
  0x49   : > { %v181_v15 = vsub.f32 %v152_v0, %v180_v14  ;;  %v184_v16 = vsub.f32 %v341_v1, %v180_v14  ;;  %v189_v17 = vsub.f32 %v342_v2, %v180_v14  ;;  %v195_v18 = vsub.f32 %v343_v4, %v180_v14 }
  0x4a   : > { %v201_v19 = vsub.f32 %v344_v6, %v180_v14  ;;  %v207_v24 = vsub.f32 %v345_v8, %v180_v14  ;;  %v213_v26 = vsub.f32 %v346_v10, %v180_v14  ;;  %v219_v28 = vsub.f32 %v347_v12, %v180_v14 }
  0x4b   : > { %v182_v20 = vmul.f32 1.442695, %v181_v15  ;;  %v185_v21 = vmul.f32 1.442695, %v184_v16  ;;  %v190_v22 = vmul.f32 1.442695, %v189_v17 }
  0x4c   : > { %v196_v23 = vmul.f32 1.442695, %v195_v18  ;;  %v202_v25 = vmul.f32 1.442695, %v201_v19  ;;  %v208_v27 = vmul.f32 1.442695, %v207_v24 }
  0x4d   : > { %417 = vpow2.f32 %v182_v20  ;;  %v214_v29 = vmul.f32 1.442695, %v213_v26  ;;  %v220_v30 = vmul.f32 1.442695, %v219_v28 }
  0x4e   : > { %419 = vpow2.f32 %v185_v21 }
  0x4f   : > { %421 = vpow2.f32 %v190_v22 }
  0x50   : > { %423 = vpow2.f32 %v196_v23 }
  0x51   : > { %425 = vpow2.f32 %v202_v25 }
  0x52   : > { %427 = vpow2.f32 %v208_v27 }
  0x53   : > { %429 = vpow2.f32 %v214_v29 }
  0x54   : > { %431 = vpow2.f32 %v220_v30 }
  0x57   : > { %v418_v31 = vpop.eup %417 }
  0x58   : > { %v420_v32 = vpop.eup %419 }
  0x59   : > { %v422_v33 = vpop.eup %421  ;;  %v187_v34 = vadd.f32 %v420_v32, %v418_v31 }
  0x5a   : > { %v424_v35 = vpop.eup %423  ;;  %v193_v36 = vmul.f32 2.0, %v422_v33 }
  0x5b   : > { %v192_v37 = vadd.f32 %v422_v33, %v187_v34  ;;  %v199_v38 = vmul.f32 3.0, %v424_v35  ;;  %v426_v39 = vpop.eup %425 }
  0x5c   : > { %v194_v40 = vadd.f32 %v420_v32, %v193_v36  ;;  %v428_v42 = vpop.eup %427  ;;  %v205_v44 = vmul.f32 4.0, %v426_v39 }
  0x5d   : > { %v198_v41 = vadd.f32 %v424_v35, %v192_v37  ;;  %v430_v46 = vpop.eup %429  ;;  %v211_v50 = vmul.f32 5.0, %v428_v42 }
  0x5e   : > { %v200_v43 = vadd.f32 %v199_v38, %v194_v40  ;;  %v432_v48 = vpop.eup %431  ;;  %v217_v54 = vmul.f32 6.0, %v430_v46 }
  0x5f   : > { %v204_v45 = vadd.f32 %v426_v39, %v198_v41  ;;  %v223_v56 = vmul.f32 7.0, %v432_v48 }
  0x60   : > { %v206_v49 = vadd.f32 %v205_v44, %v200_v43 }
  0x61   : > { %v210_v47 = vadd.f32 %v428_v42, %v204_v45 }
  0x62   : > { %v212_v53 = vadd.f32 %v211_v50, %v206_v49 }
  0x63   : > { %v216_v51 = vadd.f32 %v430_v46, %v210_v47 }
  0x64   : > { %v218_v55 = vadd.f32 %v217_v54, %v212_v53 }
  0x65   : > { %v222_v52 = vadd.f32 %v432_v48, %v216_v51 }
  0x66   : > { %v224_v57 = vadd.f32 %v223_v56, %v218_v55 }
  0x67   : > { %433 = vrcp.f32 %v222_v52 }
  0x71   : > { %v434_v58 = vpop.eup %433 }
  0x72   : > { %v226_v59 = vmul.f32 %v434_v58, %v224_v57 }
  0x74   : > { %227 = vst [vmem:[%s151_s27] sm:$0x3] %v226_v59 }
  0x75   : > { %478 = shalt.err (!%p475_p5)
}
  0x76   : > { %s479_s22 = scalar_lea.hbm %s690_s12, 32  ;;  %s483_s25 = scalar_lea.hbm %s738_s1, 64 }
  0x77   : > { %p480_p4 = scmp.ne.s32.totalorder %s690_s12, %s479_s22  ;;  %p484_p12 = scmp.lt.u32.totalorder %s690_s12, %s738_s1 }
  0x78   : > { %p485_p1 = scmp.lt.u32.totalorder %s483_s25, %s479_s22  ;;  %p487_p8 = scmp.lt.u32.totalorder %s479_s22, %s690_s12 }
  0x79   : > { %p481_p7 = pnand %p480_p4, %p746_p9 }
  0x7a   : > { %p486_p3 = por %p485_p1, %p484_p12 }
  0x7b   : > { %p482_p10 = pneg %p481_p7 }
  0x7c   : > { %p488_p11 = por %p487_p8, %p486_p3 }
  0x7e   : > { %p489_p0 = pnand %p488_p11, %p482_p10 }
  0x80   : > { %492 = shalt.err (!%p489_p0)
}
  0x81   : > { %355 = dma.vmem_to_hbm [thread:$0]  (%p746_p9), %s685_s29, 32, %s690_s12, %s229_s13  }
  0x82 PF: > { %s255_s3 = sand.u32 1, %s527_s6   ;;  %p747_p6 = scmp.ne.s32.totalorder %s743_s21, 0 }
  0x83   : > { %p748_p13 = scmp.ge.s32.totalorder %s547_s11, 2  ;;  %s256_s4 = scalar_lea.sflag [#allocation4], %s255_s3 }
  0x85   : > { %p362_p2 = pnand %p748_p13, %p747_p6 }
  0x87   : > { %522 = dma.done.wait (!%p362_p2), %s256_s4, 32  }
  0x88   : > { %524 = vsyncadd (!%p362_p2), %s256_s4, 4294967264  ;;  %s17_s11 = sadd.s32 1, %s547_s11   ;;  %s749_s6 = smov %s531_s7 }
  0x89   : > { %p14_p5 = scmp.ge.s32.totalorder %s17_s11, 4   ;;  %s750_s7 = smov %s535_s8 }
  0x8a   : > { %s751_s8 = smov %s619_s20  ;;  %s752_s9 = smov %s543_s10 }
  0x8b   : > { %s753_s10 = smov %s755_s14  ;;  %16 = sbr.rel (!%p14_p5) target bundleno = 6 (0x6), region = 76 }
  0x92   :  { %261 = vsyncpa [#allocation3], 1 }
  0x93   :  { %263 = vsyncpa [#allocation3 + $0x1], 1 }
  0x94   :  { %264 = vsyncpa [#allocation4], 1 }
  0x95   :  { %266 = vsyncpa [#allocation4 + $0x1], 1 }

</bundles_post_ra>
